<compile_context>
chip_gen: v7x
topology: tpu7x:2x2x1
jax: 0.10.0
libtpu: 0.0.40
codegen_flags: <defaults>
</compile_context>

<pallas_src>
import functools
import numpy as np
import jax
import jax.numpy as jnp
from jax import lax
from jax.experimental import pallas as pl
from jax.experimental.pallas import tpu as pltpu


def _round_up(n, m):
    return ((n + m - 1) // m) * m


# ---------------------------------------------------------------------------
# Pallas kernel: one batch tile of the whole VAE forward
# ---------------------------------------------------------------------------
def _vae_kernel(x_ref, eps_ref,
                w0_ref, b0_ref, wenc_ref, benc_ref,
                w2_ref, b2_ref, wdec_ref, bdec_ref,
                enc_ref, dec_ref, kld_ref, nll_ref,
                *, batch, tile_b, z_pad, x_pad, mask_rows):
    x = x_ref[...]                                    # (tile_b, XP)
    eps = eps_ref[...]                                # (tile_b, ZP)

    # ---- encode: h0 = relu(fc0(x)); [enc_mean | enc_cov] = h0 @ [W21|W22]
    h0 = jnp.dot(x, w0_ref[...], preferred_element_type=jnp.float32) + b0_ref[...]
    h0 = jnp.maximum(h0, 0.0)
    enc = jnp.dot(h0, wenc_ref[...], preferred_element_type=jnp.float32) + benc_ref[...]
    enc_ref[...] = enc                                # lane-dense (tile_b, 2*ZP) store
    enc_mean = enc[:, :z_pad]
    enc_cov = enc[:, z_pad:]

    # ---- reparameterize (training path): z = exp(0.5*logcov) * eps + mu
    s = jnp.exp(0.5 * enc_cov)                        # reused below: exp(logcov) = s*s
    z = s * eps + enc_mean

    # ---- decode: h2 = tanh(fc2(z)); [dec_mean | dec_cov] = h2 @ [W41|W42]
    h2 = jnp.tanh(jnp.dot(z, w2_ref[...], preferred_element_type=jnp.float32) + b2_ref[...])
    dec = jnp.dot(h2, wdec_ref[...], preferred_element_type=jnp.float32) + bdec_ref[...]
    dec_ref[...] = dec                                # lane-dense (tile_b, 2*XP) store
    dec_mean = dec[:, :x_pad]
    dec_cov = dec[:, x_pad:]

    # ---- loss partial sums (padded feature lanes contribute exactly 0)
    # KLD terms: -logcov - 1 + exp(logcov) + mu^2
    kld_terms = -enc_cov - 1.0 + s * s + enc_mean * enc_mean
    # NLL terms (gauss): logcov + exp(-logcov)*(x-mean)^2 ; the constant
    # log(2*pi) per real element is added outside the kernel.
    diff = x - dec_mean
    nll_terms = dec_cov + jnp.exp(-dec_cov) * diff * diff

    if mask_rows:  # only if the batch was padded up to a tile multiple
        row = pl.program_id(0) * tile_b + lax.broadcasted_iota(jnp.int32, (tile_b, 1), 0)
        rmask = (row < batch).astype(jnp.float32)
        kld_terms = kld_terms * rmask
        nll_terms = nll_terms * rmask

    kld_ref[0, 0] = jnp.sum(kld_terms)
    nll_ref[0, 0] = jnp.sum(nll_terms)


# ---------------------------------------------------------------------------
# Parameter packing: pad to 128-lane multiples, fuse the two heads
# ---------------------------------------------------------------------------
def pack_params(params, x_dim, h_dim, z_dim):
    XP = _round_up(x_dim, 128)
    HP = _round_up(h_dim, 128)
    ZP = _round_up(z_dim, 128)

    def pad2(w, r, c):
        return jnp.pad(w, ((0, r - w.shape[0]), (0, c - w.shape[1])))

    packed = {
        "w0": pad2(params["w0"], XP, HP),
        "b0": pad2(params["b0"], 1, HP),
        "wenc": jnp.concatenate(
            [pad2(params["w21"], HP, ZP), pad2(params["w22"], HP, ZP)], axis=1),
        "benc": jnp.concatenate(
            [pad2(params["b21"], 1, ZP), pad2(params["b22"], 1, ZP)], axis=1),
        "w2": pad2(params["w2"], ZP, HP),
        "b2": pad2(params["b2"], 1, HP),
        "wdec": jnp.concatenate(
            [pad2(params["w41"], HP, XP), pad2(params["w42"], HP, XP)], axis=1),
        "bdec": jnp.concatenate(
            [pad2(params["b41"], 1, XP), pad2(params["b42"], 1, XP)], axis=1),
    }
    return packed


# ---------------------------------------------------------------------------
# Wrapper
# ---------------------------------------------------------------------------
@jax.jit
def vae_forward(x_nchw, eps, packed):
    """Returns (kld_loss, nll_loss, (enc_mean, enc_cov), (dec_mean, dec_cov))."""
    B = x_nchw.shape[0]
    x_dim = int(np.prod(x_nchw.shape[1:]))            # torch .view(-1, x_dim)
    z_dim = eps.shape[1]
    XP, HP = packed["w0"].shape
    ZP = packed["w2"].shape[0]

    x = x_nchw.reshape(B, x_dim).astype(jnp.float32)

    # Batch tiling: one tile at tiny B, multiple "parallel" tiles otherwise.
    TILE_B = min(_round_up(B, 8), 512)
    num_tiles = pl.cdiv(B, TILE_B)
    BP = num_tiles * TILE_B

    x_p = jnp.pad(x, ((0, BP - B), (0, XP - x_dim)))
    eps_p = jnp.pad(eps.astype(jnp.float32), ((0, BP - B), (0, ZP - z_dim)))

    kernel = functools.partial(
        _vae_kernel, batch=B, tile_b=TILE_B, z_pad=ZP, x_pad=XP,
        mask_rows=(BP != B))

    flops = 2 * BP * (XP * HP + HP * 2 * ZP + ZP * HP + HP * 2 * XP)
    transcendentals = BP * (ZP + HP + XP)             # exp(0.5c), tanh, exp(-c)
    bytes_accessed = 4 * (x_p.size + eps_p.size
                          + sum(int(v.size) for v in packed.values())
                          + BP * 2 * ZP + BP * 2 * XP + 2 * num_tiles)

    full = lambda i: (0, 0)
    tile = lambda i: (i, 0)

    enc_out, dec_out, kld_parts, nll_parts = pl.pallas_call(
        kernel,
        grid=(num_tiles,),
        in_specs=[
            pl.BlockSpec((TILE_B, XP), tile),          # x
            pl.BlockSpec((TILE_B, ZP), tile),          # eps
            pl.BlockSpec((XP, HP), full),              # w0
            pl.BlockSpec((1, HP), full),               # b0
            pl.BlockSpec((HP, 2 * ZP), full),          # wenc = [w21|w22]
            pl.BlockSpec((1, 2 * ZP), full),           # benc
            pl.BlockSpec((ZP, HP), full),              # w2
            pl.BlockSpec((1, HP), full),               # b2
            pl.BlockSpec((HP, 2 * XP), full),          # wdec = [w41|w42]
            pl.BlockSpec((1, 2 * XP), full),           # bdec
        ],
        out_specs=(
            pl.BlockSpec((TILE_B, 2 * ZP), tile),      # [enc_mean | enc_cov]
            pl.BlockSpec((TILE_B, 2 * XP), tile),      # [dec_mean | dec_cov]
            pl.BlockSpec((1, 1), tile, memory_space=pltpu.MemorySpace.SMEM),
            pl.BlockSpec((1, 1), tile, memory_space=pltpu.MemorySpace.SMEM),
        ),
        out_shape=(
            jax.ShapeDtypeStruct((BP, 2 * ZP), jnp.float32),
            jax.ShapeDtypeStruct((BP, 2 * XP), jnp.float32),
            jax.ShapeDtypeStruct((num_tiles, 1), jnp.float32),
            jax.ShapeDtypeStruct((num_tiles, 1), jnp.float32),
        ),
        compiler_params=pltpu.CompilerParams(dimension_semantics=("parallel",)),
        cost_estimate=pl.CostEstimate(flops=flops,
                                      transcendentals=transcendentals,
                                      bytes_accessed=bytes_accessed),
    )(x_p, eps_p, packed["w0"], packed["b0"], packed["wenc"], packed["benc"],
      packed["w2"], packed["b2"], packed["wdec"], packed["bdec"])

    # Slice the lane-dense slabs back to the logical shapes.
    enc_mean = enc_out[:B, :z_dim]
    enc_cov = enc_out[:B, ZP:ZP + z_dim]
    dec_mean = dec_out[:B, :x_dim]
    dec_cov = dec_out[:B, XP:XP + x_dim]

    log2pi = float(np.log(2.0 * np.pi))
    kld = 0.5 * jnp.sum(kld_parts) / (B * x_dim)
    nll = 0.5 * (jnp.sum(nll_parts) + B * x_dim * log2pi) / B
    return kld, nll, (enc_mean, enc_cov), (dec_mean, dec_cov)


# ---------------------------------------------------------------------------
# Init + plain-JAX reference
# ---------------------------------------------------------------------------
def _init_params(key, x_dim, h_dim, z_dim):
    """PyTorch-Linear-style init; weights stored as (in, out)."""
    def linear(k, fan_in, fan_out):
        k1, k2 = jax.random.split(k)
        bound = 1.0 / np.sqrt(fan_in)
        w = jax.random.uniform(k1, (fan_in, fan_out), jnp.float32, -bound, bound)
        b = jax.random.uniform(k2, (1, fan_out), jnp.float32, -bound, bound)
        return w, b

    ks = jax.random.split(key, 6)
    p = {}
    p["w0"], p["b0"] = linear(ks[0], x_dim, h_dim)
    p["w21"], p["b21"] = linear(ks[1], h_dim, z_dim)
    p["w22"], p["b22"] = linear(ks[2], h_dim, z_dim)
    p["w2"], p["b2"] = linear(ks[3], z_dim, h_dim)
    p["w41"], p["b41"] = linear(ks[4], h_dim, x_dim)
    p["w42"], p["b42"] = linear(ks[5], h_dim, x_dim)
    return p


def _reference(x_nchw, eps, params, x_dim):
    x = x_nchw.reshape(-1, x_dim).astype(jnp.float32)
    B = x.shape[0]
    h0 = jnp.maximum(x @ params["w0"] + params["b0"], 0.0)
    mu = h0 @ params["w21"] + params["b21"]
    logcov = h0 @ params["w22"] + params["b22"]
    z = jnp.exp(0.5 * logcov) * eps + mu
    h2 = jnp.tanh(z @ params["w2"] + params["b2"])
    dm = h2 @ params["w41"] + params["b41"]
    dc = h2 @ params["w42"] + params["b42"]
    kld = 0.5 * jnp.sum(-logcov - 1.0 + jnp.exp(logcov) + mu ** 2) / (B * x_dim)
    nll = 0.5 * jnp.sum(dc + jnp.exp(-dc) * (x - dm) ** 2 + np.log(2 * np.pi)) / B
    return kld, nll, (mu, logcov), (dm, dc)


if __name__ == "__main__":
    # Shapes implied by the module: x_dim=16, t_dim=4 -> d_dim=4, l_dim=10,
    # z_dim=40; h_dim=32; batch=8; NCHW input (B, 1, 4, 4).
    x_dim, h_dim, t_dim = 16, 32, 4
    d_dim = x_dim // t_dim
    l_dim = d_dim * (d_dim + 1) // 2
    z_dim = t_dim * l_dim
    B = 8

    key = jax.random.PRNGKey(0)
    k_param, k_x, k_eps = jax.random.split(key, 3)
    params = _init_params(k_param, x_dim, h_dim, z_dim)
    packed = pack_params(params, x_dim, h_dim, z_dim)

    x = jax.random.uniform(k_x, (B, 1, 4, 4), jnp.float32)
    # eps = deterministic stand-in for cov.data.new(...).normal_() (training path)
    eps = jax.random.normal(k_eps, (B, z_dim), jnp.float32)

    kld, nll, (enc_mean, enc_cov), (dec_mean, dec_cov) = vae_forward(x, eps, packed)
    jax.block_until_ready((kld, nll, enc_mean, enc_cov, dec_mean, dec_cov))

    # TODO(synk): original forward prints enc_mean[0, 0]; omitted so the only
    # output is KERNEL_OK.
    # TODO(synk): dist == 'bce' (binary_cross_entropy) loss branch not
    # implemented; kernel computes the 'gauss' NLL path.

    r_kld, r_nll, (r_mu, r_lc), (r_dm, r_dc) = _reference(x, eps, params, x_dim)
    np.testing.assert_allclose(np.asarray(kld), np.asarray(r_kld), rtol=1e-4, atol=1e-4)
    np.testing.assert_allclose(np.asarray(nll), np.asarray(r_nll), rtol=1e-4, atol=1e-4)
    np.testing.assert_allclose(np.asarray(enc_mean), np.asarray(r_mu), rtol=1e-4, atol=1e-4)
    np.testing.assert_allclose(np.asarray(enc_cov), np.asarray(r_lc), rtol=1e-4, atol=1e-4)
    np.testing.assert_allclose(np.asarray(dec_mean), np.asarray(r_dm), rtol=1e-4, atol=1e-4)
    np.testing.assert_allclose(np.asarray(dec_cov), np.asarray(r_dc), rtol=1e-4, atol=1e-4)

    print("KERNEL_OK")
</pallas_src>

<mosaic_0001>
module attributes {stable_mosaic.version = 11 : i64} {
  func.func @_vae_kernel(%arg0: i32, %arg1: memref<8x128xf32, #tpu.memory_space<vmem>>, %arg2: memref<8x128xf32, #tpu.memory_space<vmem>>, %arg3: memref<128x128xf32, #tpu.memory_space<vmem>>, %arg4: memref<1x128xf32, #tpu.memory_space<vmem>>, %arg5: memref<128x256xf32, #tpu.memory_space<vmem>>, %arg6: memref<1x256xf32, #tpu.memory_space<vmem>>, %arg7: memref<128x128xf32, #tpu.memory_space<vmem>>, %arg8: memref<1x128xf32, #tpu.memory_space<vmem>>, %arg9: memref<128x256xf32, #tpu.memory_space<vmem>>, %arg10: memref<1x256xf32, #tpu.memory_space<vmem>>, %arg11: memref<8x256xf32, #tpu.memory_space<vmem>>, %arg12: memref<8x256xf32, #tpu.memory_space<vmem>>, %arg13: memref<1x1xf32, #tpu.memory_space<smem>>, %arg14: memref<1x1xf32, #tpu.memory_space<smem>>) attributes {dimension_semantics = [#tpu.dimension_semantics<parallel>], iteration_bounds = array<i64: 1>, scalar_prefetch = 0 : i64, scratch_operands = 0 : i64, tpu.core_type = #tpu.core_type<tc>, window_params = [{transform_indices = @transform_0, window_bounds = array<i64: 8, 128>}, {transform_indices = @transform_1, window_bounds = array<i64: 8, 128>}, {pipeline_mode = #tpu.pipeline_mode<synchronous>, transform_indices = @transform_2, window_bounds = array<i64: 128, 128>}, {pipeline_mode = #tpu.pipeline_mode<synchronous>, transform_indices = @transform_3, window_bounds = array<i64: 1, 128>}, {pipeline_mode = #tpu.pipeline_mode<synchronous>, transform_indices = @transform_4, window_bounds = array<i64: 128, 256>}, {pipeline_mode = #tpu.pipeline_mode<synchronous>, transform_indices = @transform_5, window_bounds = array<i64: 1, 256>}, {pipeline_mode = #tpu.pipeline_mode<synchronous>, transform_indices = @transform_6, window_bounds = array<i64: 128, 128>}, {pipeline_mode = #tpu.pipeline_mode<synchronous>, transform_indices = @transform_7, window_bounds = array<i64: 1, 128>}, {pipeline_mode = #tpu.pipeline_mode<synchronous>, transform_indices = @transform_8, window_bounds = array<i64: 128, 256>}, {pipeline_mode = #tpu.pipeline_mode<synchronous>, transform_indices = @transform_9, window_bounds = array<i64: 1, 256>}, {transform_indices = @transform_10, window_bounds = array<i64: 8, 256>}, {transform_indices = @transform_11, window_bounds = array<i64: 8, 256>}, {transform_indices = @transform_12, window_bounds = array<i64: 1, 1>}, {transform_indices = @transform_13, window_bounds = array<i64: 1, 1>}]} {
    %c0 = arith.constant 0 : index
    %c0_0 = arith.constant 0 : index
    %0 = vector.load %arg1[%c0, %c0_0] : memref<8x128xf32, #tpu.memory_space<vmem>>, vector<8x128xf32>
    %c0_1 = arith.constant 0 : index
    %c0_2 = arith.constant 0 : index
    %1 = vector.load %arg2[%c0_1, %c0_2] : memref<8x128xf32, #tpu.memory_space<vmem>>, vector<8x128xf32>
    %c0_3 = arith.constant 0 : index
    %c0_4 = arith.constant 0 : index
    %2 = vector.load %arg3[%c0_3, %c0_4] : memref<128x128xf32, #tpu.memory_space<vmem>>, vector<128x128xf32>
    %cst = arith.constant dense<0.000000e+00> : vector<8x128xf32>
    %3 = tpu.matmul %0, %2, %cst {dimension_numbers = #tpu.dot_dimension_numbers<[1], [0], [0], [1], [0, 0, 1, 1], [], []>} : vector<8x128xf32>, vector<128x128xf32>, vector<8x128xf32> -> vector<8x128xf32>
    %c0_5 = arith.constant 0 : index
    %c0_6 = arith.constant 0 : index
    %4 = vector.load %arg4[%c0_5, %c0_6] : memref<1x128xf32, #tpu.memory_space<vmem>>, vector<1x128xf32>
    %5 = vector.broadcast %4 : vector<1x128xf32> to vector<8x128xf32>
    %6 = arith.addf %3, %5 : vector<8x128xf32>
    %cst_7 = arith.constant 0.000000e+00 : f32
    %7 = vector.broadcast %cst_7 : f32 to vector<8x128xf32>
    %8 = arith.maximumf %6, %7 : vector<8x128xf32>
    %c0_8 = arith.constant 0 : index
    %c0_9 = arith.constant 0 : index
    %9 = vector.load %arg5[%c0_8, %c0_9] : memref<128x256xf32, #tpu.memory_space<vmem>>, vector<128x256xf32>
    %cst_10 = arith.constant dense<0.000000e+00> : vector<8x256xf32>
    %10 = tpu.matmul %8, %9, %cst_10 {dimension_numbers = #tpu.dot_dimension_numbers<[1], [0], [0], [1], [0, 0, 1, 1], [], []>} : vector<8x128xf32>, vector<128x256xf32>, vector<8x256xf32> -> vector<8x256xf32>
    %c0_11 = arith.constant 0 : index
    %c0_12 = arith.constant 0 : index
    %11 = vector.load %arg6[%c0_11, %c0_12] : memref<1x256xf32, #tpu.memory_space<vmem>>, vector<1x256xf32>
    %12 = vector.broadcast %11 : vector<1x256xf32> to vector<8x256xf32>
    %13 = arith.addf %10, %12 : vector<8x256xf32>
    %c0_13 = arith.constant 0 : index
    %c0_14 = arith.constant 0 : index
    %14 = vector.load %arg11[%c0_13, %c0_14] : memref<8x256xf32, #tpu.memory_space<vmem>>, vector<8x256xf32>
    tpu.vector_store %arg11[%c0_13, %c0_14], %13 {strides = array<i32>} : memref<8x256xf32, #tpu.memory_space<vmem>>, vector<8x256xf32>,
    %15 = vector.extract_strided_slice %13 {offsets = [0, 0], sizes = [8, 128], strides = [1, 1]} : vector<8x256xf32> to vector<8x128xf32>
    %16 = vector.extract_strided_slice %13 {offsets = [0, 128], sizes = [8, 128], strides = [1, 1]} : vector<8x256xf32> to vector<8x128xf32>
    %cst_15 = arith.constant 5.000000e-01 : f32
    %17 = vector.broadcast %cst_15 : f32 to vector<8x128xf32>
    %18 = arith.mulf %17, %16 : vector<8x128xf32>
    %19 = math.exp %18 : vector<8x128xf32>
    %20 = arith.mulf %19, %1 : vector<8x128xf32>
    %21 = arith.addf %20, %15 : vector<8x128xf32>
    %c0_16 = arith.constant 0 : index
    %c0_17 = arith.constant 0 : index
    %22 = vector.load %arg7[%c0_16, %c0_17] : memref<128x128xf32, #tpu.memory_space<vmem>>, vector<128x128xf32>
    %cst_18 = arith.constant dense<0.000000e+00> : vector<8x128xf32>
    %23 = tpu.matmul %21, %22, %cst_18 {dimension_numbers = #tpu.dot_dimension_numbers<[1], [0], [0], [1], [0, 0, 1, 1], [], []>} : vector<8x128xf32>, vector<128x128xf32>, vector<8x128xf32> -> vector<8x128xf32>
    %c0_19 = arith.constant 0 : index
    %c0_20 = arith.constant 0 : index
    %24 = vector.load %arg8[%c0_19, %c0_20] : memref<1x128xf32, #tpu.memory_space<vmem>>, vector<1x128xf32>
    %25 = vector.broadcast %24 : vector<1x128xf32> to vector<8x128xf32>
    %26 = arith.addf %23, %25 : vector<8x128xf32>
    %27 = math.tanh %26 : vector<8x128xf32>
    %c0_21 = arith.constant 0 : index
    %c0_22 = arith.constant 0 : index
    %28 = vector.load %arg9[%c0_21, %c0_22] : memref<128x256xf32, #tpu.memory_space<vmem>>, vector<128x256xf32>
    %cst_23 = arith.constant dense<0.000000e+00> : vector<8x256xf32>
    %29 = tpu.matmul %27, %28, %cst_23 {dimension_numbers = #tpu.dot_dimension_numbers<[1], [0], [0], [1], [0, 0, 1, 1], [], []>} : vector<8x128xf32>, vector<128x256xf32>, vector<8x256xf32> -> vector<8x256xf32>
    %c0_24 = arith.constant 0 : index
    %c0_25 = arith.constant 0 : index
    %30 = vector.load %arg10[%c0_24, %c0_25] : memref<1x256xf32, #tpu.memory_space<vmem>>, vector<1x256xf32>
    %31 = vector.broadcast %30 : vector<1x256xf32> to vector<8x256xf32>
    %32 = arith.addf %29, %31 : vector<8x256xf32>
    %c0_26 = arith.constant 0 : index
    %c0_27 = arith.constant 0 : index
    %33 = vector.load %arg12[%c0_26, %c0_27] : memref<8x256xf32, #tpu.memory_space<vmem>>, vector<8x256xf32>
    tpu.vector_store %arg12[%c0_26, %c0_27], %32 {strides = array<i32>} : memref<8x256xf32, #tpu.memory_space<vmem>>, vector<8x256xf32>,
    %34 = vector.extract_strided_slice %32 {offsets = [0, 0], sizes = [8, 128], strides = [1, 1]} : vector<8x256xf32> to vector<8x128xf32>
    %35 = vector.extract_strided_slice %32 {offsets = [0, 128], sizes = [8, 128], strides = [1, 1]} : vector<8x256xf32> to vector<8x128xf32>
    %cst_28 = arith.constant 0.000000e+00 : f32
    %36 = vector.broadcast %cst_28 : f32 to vector<8x128xf32>
    %37 = arith.subf %36, %16 : vector<8x128xf32>
    %cst_29 = arith.constant 1.000000e+00 : f32
    %38 = vector.broadcast %cst_29 : f32 to vector<8x128xf32>
    %39 = arith.subf %37, %38 : vector<8x128xf32>
    %40 = arith.mulf %19, %19 : vector<8x128xf32>
    %41 = arith.addf %39, %40 : vector<8x128xf32>
    %42 = arith.mulf %15, %15 : vector<8x128xf32>
    %43 = arith.addf %41, %42 : vector<8x128xf32>
    %44 = arith.subf %0, %34 : vector<8x128xf32>
    %cst_30 = arith.constant 0.000000e+00 : f32
    %45 = vector.broadcast %cst_30 : f32 to vector<8x128xf32>
    %46 = arith.subf %45, %35 : vector<8x128xf32>
    %47 = math.exp %46 : vector<8x128xf32>
    %48 = arith.mulf %47, %44 : vector<8x128xf32>
    %49 = arith.mulf %48, %44 : vector<8x128xf32>
    %50 = arith.addf %35, %49 : vector<8x128xf32>
    %51 = vector.shape_cast %43 : vector<8x128xf32> to vector<1x8x128xf32>
    %cst_31 = arith.constant dense<0.000000e+00> : vector<1xf32>
    %52 = vector.multi_reduction <add>, %51, %cst_31 [1, 2] : vector<1x8x128xf32> to vector<1xf32>
    %53 = vector.shape_cast %52 : vector<1xf32> to vector<1x1x1xf32>
    %54 = vector.extract %53[0, 0, 0] : f32 from vector<1x1x1xf32>
    %c0_32 = arith.constant 0 : index
    %c0_33 = arith.constant 0 : index
    %55 = memref.load %arg13[%c0_32, %c0_33] : memref<1x1xf32, #tpu.memory_space<smem>>
    memref.store %54, %arg13[%c0_32, %c0_33] : memref<1x1xf32, #tpu.memory_space<smem>>
    %56 = vector.shape_cast %50 : vector<8x128xf32> to vector<1x8x128xf32>
    %cst_34 = arith.constant dense<0.000000e+00> : vector<1xf32>
    %57 = vector.multi_reduction <add>, %56, %cst_34 [1, 2] : vector<1x8x128xf32> to vector<1xf32>
    %58 = vector.shape_cast %57 : vector<1xf32> to vector<1x1x1xf32>
    %59 = vector.extract %58[0, 0, 0] : f32 from vector<1x1x1xf32>
    %c0_35 = arith.constant 0 : index
    %c0_36 = arith.constant 0 : index
    %60 = memref.load %arg14[%c0_35, %c0_36] : memref<1x1xf32, #tpu.memory_space<smem>>
    memref.store %59, %arg14[%c0_35, %c0_36] : memref<1x1xf32, #tpu.memory_space<smem>>
    return
  }
  func.func @transform_0(%arg0: i32) -> (i32, i32) {
    %c0_i32 = arith.constant 0 : i32
    %c0_i32_0 = arith.constant 0 : i32
    return %arg0, %c0_i32 : i32, i32
  }
  func.func @transform_1(%arg0: i32) -> (i32, i32) {
    %c0_i32 = arith.constant 0 : i32
    %c0_i32_0 = arith.constant 0 : i32
    return %arg0, %c0_i32 : i32, i32
  }
  func.func @transform_2(%arg0: i32) -> (i32, i32) {
    %c0_i32 = arith.constant 0 : i32
    %c0_i32_0 = arith.constant 0 : i32
    %c0_i32_1 = arith.constant 0 : i32
    return %c0_i32, %c0_i32_0 : i32, i32
  }
  func.func @transform_3(%arg0: i32) -> (i32, i32) {
    %c0_i32 = arith.constant 0 : i32
    %c0_i32_0 = arith.constant 0 : i32
    %c0_i32_1 = arith.constant 0 : i32
    return %c0_i32, %c0_i32_0 : i32, i32
  }
  func.func @transform_4(%arg0: i32) -> (i32, i32) {
    %c0_i32 = arith.constant 0 : i32
    %c0_i32_0 = arith.constant 0 : i32
    %c0_i32_1 = arith.constant 0 : i32
    return %c0_i32, %c0_i32_0 : i32, i32
  }
  func.func @transform_5(%arg0: i32) -> (i32, i32) {
    %c0_i32 = arith.constant 0 : i32
    %c0_i32_0 = arith.constant 0 : i32
    %c0_i32_1 = arith.constant 0 : i32
    return %c0_i32, %c0_i32_0 : i32, i32
  }
  func.func @transform_6(%arg0: i32) -> (i32, i32) {
    %c0_i32 = arith.constant 0 : i32
    %c0_i32_0 = arith.constant 0 : i32
    %c0_i32_1 = arith.constant 0 : i32
    return %c0_i32, %c0_i32_0 : i32, i32
  }
  func.func @transform_7(%arg0: i32) -> (i32, i32) {
    %c0_i32 = arith.constant 0 : i32
    %c0_i32_0 = arith.constant 0 : i32
    %c0_i32_1 = arith.constant 0 : i32
    return %c0_i32, %c0_i32_0 : i32, i32
  }
  func.func @transform_8(%arg0: i32) -> (i32, i32) {
    %c0_i32 = arith.constant 0 : i32
    %c0_i32_0 = arith.constant 0 : i32
    %c0_i32_1 = arith.constant 0 : i32
    return %c0_i32, %c0_i32_0 : i32, i32
  }
  func.func @transform_9(%arg0: i32) -> (i32, i32) {
    %c0_i32 = arith.constant 0 : i32
    %c0_i32_0 = arith.constant 0 : i32
    %c0_i32_1 = arith.constant 0 : i32
    return %c0_i32, %c0_i32_0 : i32, i32
  }
  func.func @transform_10(%arg0: i32) -> (i32, i32) {
    %c0_i32 = arith.constant 0 : i32
    %c0_i32_0 = arith.constant 0 : i32
    return %arg0, %c0_i32 : i32, i32
  }
  func.func @transform_11(%arg0: i32) -> (i32, i32) {
    %c0_i32 = arith.constant 0 : i32
    %c0_i32_0 = arith.constant 0 : i32
    return %arg0, %c0_i32 : i32, i32
  }
  func.func @transform_12(%arg0: i32) -> (i32, i32) {
    %c0_i32 = arith.constant 0 : i32
    %c0_i32_0 = arith.constant 0 : i32
    return %arg0, %c0_i32 : i32, i32
  }
  func.func @transform_13(%arg0: i32) -> (i32, i32) {
    %c0_i32 = arith.constant 0 : i32
    %c0_i32_0 = arith.constant 0 : i32
    return %arg0, %c0_i32 : i32, i32
  }
}

</mosaic_0001>

<bundles_post_ra>
// kernel: vae_forward.1
= control target key start
LH: loop header
LB: loop body
LE: loop exit
PB: predicated region body
PF: predicated region fallthrough
CT: control target
= control target key end

     0   :  { %19 = vsyncpa [#allocation3], 0  ;;  %s1192_s0 = inlined_call_operand.vmem [shape: f32[8,128], index: 0, kind: input, shape index: {}]   ;;  %s1193_s1 = inlined_call_operand.vmem [shape: f32[8,128], index: 1, kind: input, shape index: {}]   ;;  %s1194_s2 = inlined_call_operand.hbm [shape: f32[128,128], index: 2, kind: input, shape index: {}]   ;;  %s1195_s3 = inlined_call_operand.vmem [shape: f32[1,128], index: 3, kind: input, shape index: {}]   ;;  %s1196_s4 = inlined_call_operand.hbm [shape: f32[128,256], index: 4, kind: input, shape index: {}]   ;;  %s1197_s5 = inlined_call_operand.vmem [shape: f32[1,256], index: 5, kind: input, shape index: {}]   ;;  %s1198_s6 = inlined_call_operand.hbm [shape: f32[128,128], index: 6, kind: input, shape index: {}]   ;;  %s1199_s7 = inlined_call_operand.vmem [shape: f32[1,128], index: 7, kind: input, shape index: {}]   ;;  %s1200_s8 = inlined_call_operand.hbm [shape: f32[128,256], index: 8, kind: input, shape index: {}]   ;;  %s1201_s9 = inlined_call_operand.vmem [shape: f32[1,256], index: 9, kind: input, shape index: {}]   ;;  %s1202_s10 = inlined_call_operand.vmem [shape: f32[8,256], index: 10, kind: output, shape index: {0}]   ;;  %s1203_s11 = inlined_call_operand.vmem [shape: f32[8,256], index: 11, kind: output, shape index: {1}]   ;;  %s1204_s12 = inlined_call_operand.hbm [shape: f32[1,1], index: 12, kind: output, shape index: {2}]   ;;  %s1205_s13 = inlined_call_operand.hbm [shape: f32[1,1], index: 13, kind: output, shape index: {3}]  }
   0x1   :  { %20 = vsyncpa [#allocation6], 0 }
   0x2   :  { %21 = vsyncpa [#allocation9], 0 }
   0x3   :  { %22 = vsyncpa [#allocation4], 0 }
   0x4   :  { %23 = vsyncpa [#allocation12], 0  ;;  %s956_s25 = smov [#allocation5]   ;;  %s838_s29 = scalar_lea.hbm %s1196_s4, 4096 }
   0x5   :  { %s47_s26 = sshll.u32 %s956_s25, 4  ;;  %p839_p0 = scmp.ne.s32.totalorder %s1196_s4, %s838_s29  ;;  %s48_s26 = int_to_ptr.vmem [resolvable:$true] %s47_s26 }
   0x6   :  { %p842_p1 = scmp.lt.u32.totalorder %s838_s29, %s1196_s4 }
   0x8   :  { %p844_p2 = pnand %p842_p1, %p839_p0 }
   0xa   :  { %847 = shalt.err (!%p844_p2)
}
   0xb   :  { %s848_s17 = scalar_lea.vmem %s48_s26, 4096  ;;  %p853_p4 = scmp.lt.s32.totalorder %s48_s26, %s48_s26 }
   0xc   :  { %p849_p3 = scmp.ne.s32.totalorder %s48_s26, %s848_s17  ;;  %p854_p5 = scmp.lt.s32.totalorder %s848_s17, %s848_s17 }
   0xe   :  { %p855_p6 = por %p854_p5, %p853_p4 }
  0x10   :  { %p856_p7 = pnand %p855_p6, %p849_p3 }
  0x12   :  { %859 = shalt.err (!%p856_p7)
}
  0x13   :  { %s957_s18 = smov 256   ;;  %s958_s19 = smov 16  }
  0x14   :  { %53 = dma.hbm_to_vmem [thread:$0]  %s1196_s4, 4096, %s48_s26, [#allocation6], %s957_s18, %s957_s18, %s958_s19  }
  0x15   :  { %s959_s22 = smov [#allocation2]   ;;  %s860_s27 = scalar_lea.hbm %s1194_s2, 2048 }
  0x16   :  { %s33_s23 = sshll.u32 %s959_s22, 4  ;;  %p861_p8 = scmp.ne.s32.totalorder %s1194_s2, %s860_s27  ;;  %s34_s23 = int_to_ptr.vmem [resolvable:$true] %s33_s23 }
  0x17   :  { %p864_p9 = scmp.lt.u32.totalorder %s860_s27, %s1194_s2 }
  0x19   :  { %p866_p10 = pnand %p864_p9, %p861_p8 }
  0x1b   :  { %869 = shalt.err (!%p866_p10)
}
  0x1c   :  { %s870_s15 = scalar_lea.vmem %s34_s23, 2048  ;;  %p875_p12 = scmp.lt.s32.totalorder %s34_s23, %s34_s23 }
  0x1d   :  { %p871_p11 = scmp.ne.s32.totalorder %s34_s23, %s870_s15  ;;  %p876_p13 = scmp.lt.s32.totalorder %s870_s15, %s870_s15 }
  0x1f   :  { %p877_p0 = por %p876_p13, %p875_p12 }
  0x21   :  { %p878_p1 = pnand %p877_p0, %p871_p11 }
  0x23   :  { %881 = shalt.err (!%p878_p1)
}
  0x24   :  { %s960_s4 = smov 128   ;;  %s961_s26 = smov 8  }
  0x25   :  { %39 = dma.hbm_to_vmem [thread:$0]  %s1194_s2, 2048, %s34_s23, [#allocation3], %s960_s4, %s960_s4, %s961_s26  }
  0x26   :  { %s962_s20 = smov [#allocation7]   ;;  %s963_s22 = smov [#allocation8]  }
  0x27   :  { %s61_s21 = sshll.u32 %s962_s20, 4  ;;  %s75_s24 = sshll.u32 %s963_s22, 4  ;;  %s62_s21 = int_to_ptr.vmem [resolvable:$true] %s61_s21  ;;  %s1066_s24 = int_to_ptr.vmem [resolvable:$true] %s75_s24 }
  0x28   :  { %s882_s28 = scalar_lea.hbm %s1198_s6, 2048 }
  0x29   :  { %p883_p2 = scmp.ne.s32.totalorder %s1198_s6, %s882_s28  ;;  %p886_p3 = scmp.lt.u32.totalorder %s882_s28, %s1198_s6 }
  0x2b   :  { %p888_p4 = pnand %p886_p3, %p883_p2 }
  0x2d   :  { %891 = shalt.err (!%p888_p4)
}
  0x2e   :  { %s892_s2 = scalar_lea.vmem %s62_s21, 2048  ;;  %p897_p6 = scmp.lt.s32.totalorder %s62_s21, %s62_s21 }
  0x2f   :  { %p893_p5 = scmp.ne.s32.totalorder %s62_s21, %s892_s2  ;;  %p898_p7 = scmp.lt.s32.totalorder %s892_s2, %s892_s2 }
  0x31   :  { %p899_p8 = por %p898_p7, %p897_p6 }
  0x33   :  { %p900_p9 = pnand %p899_p8, %p893_p5 }
  0x35   :  { %903 = shalt.err (!%p900_p9)
}
  0x36   :  { %67 = dma.hbm_to_vmem [thread:$0]  %s1198_s6, 2048, %s62_s21, [#allocation6], %s960_s4, %s960_s4, %s961_s26  }
  0x37   :  { %s904_s22 = scalar_lea.hbm %s1200_s8, 4096 }
  0x38   :  { %p905_p10 = scmp.ne.s32.totalorder %s1200_s8, %s904_s22  ;;  %p908_p11 = scmp.lt.u32.totalorder %s904_s22, %s1200_s8 }
  0x3a   :  { %p910_p12 = pnand %p908_p11, %p905_p10 }
  0x3c   :  { %913 = shalt.err (!%p910_p12)
}
  0x3d   :  { %s914_s30 = scalar_lea.vmem %s1066_s24, 4096  ;;  %p919_p0 = scmp.lt.s32.totalorder %s1066_s24, %s1066_s24 }
  0x3e   :  { %p915_p13 = scmp.ne.s32.totalorder %s1066_s24, %s914_s30  ;;  %p920_p1 = scmp.lt.s32.totalorder %s914_s30, %s914_s30 }
  0x40   :  { %p921_p2 = por %p920_p1, %p919_p0 }
  0x42   :  { %p922_p3 = pnand %p921_p2, %p915_p13 }
  0x44   :  { %925 = shalt.err (!%p922_p3)
}
  0x45   :  { %81 = dma.hbm_to_vmem [thread:$0]  %s1200_s8, 4096, %s1066_s24, [#allocation9], %s957_s18, %s957_s18, %s958_s19  }
  0x46   :  { %946 = dma.done.wait [#allocation3], 2048  }
  0x47   :  { %947 = vsyncadd [#allocation3], 4294965248 }
  0x48   :  { %948 = dma.done.wait [#allocation6], 6144  }
  0x49   :  { %949 = vsyncadd [#allocation6], 4294961152 }
  0x4a   :  { %950 = dma.done.wait [#allocation9], 4096  }
  0x4b   :  { %951 = vsyncadd [#allocation9], 4294963200  ;;  %v964_v0 = vmov 0.0|0.0   ;;  %vm965_vm0 = vmmov 0   ;;  %v966_v1 = vmov 0.0   ;;  %v98_v2 = vld [vmem:[#allocation2] sm:$0xff] }
  0x4c   :  { %703 = vmatprep.subr.bf16.mxu0 %v964_v0  ;;  %665 = vmatprep.mubr.msk.f32.mxu0 %vm965_vm0, %v966_v1  ;;  %v99_v3 = vld [vmem:[#allocation2 + $0x8] sm:$0xff]  ;;  %v100_v4 = vld [vmem:[#allocation2 + $0x10] sm:$0xff]  ;;  %v101_v6 = vld [vmem:[#allocation2 + $0x18] sm:$0xff]  ;;  %s926_s28 = scalar_lea.hbm %s1204_s12, 16 }
  0x4d   :  { %300 = vmatprep.mubr.f32.mxu1 %v966_v1  ;;  %v704_v5 = vpack.c.bf16 %v99_v3, %v98_v2  ;;  %v707_v7 = vpack.c.bf16 %v101_v6, %v100_v4  ;;  %v102_v8 = vld [vmem:[#allocation2 + $0x20] sm:$0xff]  ;;  %v103_v9 = vld [vmem:[#allocation2 + $0x28] sm:$0xff]  ;;  %v104_v11 = vld [vmem:[#allocation2 + $0x30] sm:$0xff]  ;;  %p927_p4 = scmp.ne.s32.totalorder %s1204_s12, %s926_s28  ;;  %p930_p5 = scmp.lt.u32.totalorder %s926_s28, %s1204_s12 }
  0x4e   :  { %v193_v10 = vld [vmem:[#allocation5 + $0x8] sm:$0xff]  ;;  %v105_v12 = vld [vmem:[#allocation2 + $0x38] sm:$0xff]  ;;  %v192_v14 = vld [vmem:[#allocation5] sm:$0xff]  ;;  %v710_v16 = vpack.c.bf16 %v103_v9, %v102_v8 }
  0x4f   :  { %705 = vmatpush3.bf16.msra.mxu0 %v704_v5  ;;  %v195_v13 = vld [vmem:[#allocation5 + $0x18] sm:$0xff]  ;;  %v194_v15 = vld [vmem:[#allocation5 + $0x10] sm:$0xff]  ;;  %v197_v19 = vld [vmem:[#allocation5 + $0x28] sm:$0xff]  ;;  %v713_v27 = vpack.c.bf16 %v105_v12, %v104_v11  ;;  %p932_p6 = pnand %p930_p5, %p927_p4 }
  0x50   :  { %706 = vmatprep.subr.bf16.mxu0 %v964_v0  ;;  %v727_v17 = vpack.c.bf16 %v195_v13, %v193_v10  ;;  %v729_v18 = vpack.c.bf16 %v194_v15, %v192_v14  ;;  %v199_v20 = vld [vmem:[#allocation5 + $0x38] sm:$0xff]  ;;  %v196_v21 = vld [vmem:[#allocation5 + $0x20] sm:$0xff]  ;;  %v198_v23 = vld [vmem:[#allocation5 + $0x30] sm:$0xff] }
  0x51   :  { %v731_v22 = vpack.c.bf16 %v199_v20, %v197_v19  ;;  %v201_v24 = vld [vmem:[#allocation5 + $0x48] sm:$0xff]  ;;  %v203_v25 = vld [vmem:[#allocation5 + $0x58] sm:$0xff]  ;;  %v733_v26 = vpack.c.bf16 %v198_v23, %v196_v21  ;;  %v106_v28 = vld [vmem:[#allocation2 + $0x40] sm:$0xff] }
  0x52   :  { %728 = vmatprep.subr.bf16.mxu1 %v727_v17  ;;  %v735_v29 = vpack.c.bf16 %v203_v25, %v201_v24  ;;  %v200_v30 = vld [vmem:[#allocation5 + $0x40] sm:$0xff]  ;;  %v202_v31 = vld [vmem:[#allocation5 + $0x50] sm:$0xff]  ;;  %v107_v32 = vld [vmem:[#allocation2 + $0x48] sm:$0xff] }
  0x53   :  { %708 = vmatpush3.bf16.msra.mxu0 %v707_v7  ;;  %730 = vmatpush1.bf16.msra.mxu1 %v729_v18  ;;  %v205_v33 = vld [vmem:[#allocation5 + $0x68] sm:$0xff]  ;;  %v207_v34 = vld [vmem:[#allocation5 + $0x78] sm:$0xff]  ;;  %v737_v35 = vpack.c.bf16 %v202_v31, %v200_v30  ;;  %v716_v36 = vpack.c.bf16 %v107_v32, %v106_v28  ;;  %v108_v37 = vld [vmem:[#allocation2 + $0x50] sm:$0xff] }
  0x54   :  { %709 = vmatprep.subr.bf16.mxu0 %v964_v0  ;;  %732 = vmatprep.subr.bf16.mxu1 %v731_v22  ;;  %v739_v38 = vpack.c.bf16 %v207_v34, %v205_v33  ;;  %v204_v39 = vld [vmem:[#allocation5 + $0x60] sm:$0xff]  ;;  %v206_v40 = vld [vmem:[#allocation5 + $0x70] sm:$0xff]  ;;  %v109_v41 = vld [vmem:[#allocation2 + $0x58] sm:$0xff] }
  0x55   :  { %v209_v42 = vld [vmem:[#allocation5 + $0x88] sm:$0xff]  ;;  %v211_v43 = vld [vmem:[#allocation5 + $0x98] sm:$0xff]  ;;  %v741_v44 = vpack.c.bf16 %v206_v40, %v204_v39  ;;  %v719_v45 = vpack.c.bf16 %v109_v41, %v108_v37  ;;  %v110_v46 = vld [vmem:[#allocation2 + $0x60] sm:$0xff]  ;;  %v226_v41 = vlaneseq }
  0x56   :  { %v743_v47 = vpack.c.bf16 %v211_v43, %v209_v42  ;;  %v208_v48 = vld [vmem:[#allocation5 + $0x80] sm:$0xff]  ;;  %v210_v49 = vld [vmem:[#allocation5 + $0x90] sm:$0xff]  ;;  %v111_v50 = vld [vmem:[#allocation2 + $0x68] sm:$0xff] }
  0x57   :  { %711 = vmatpush3.bf16.msra.mxu0 %v710_v16  ;;  %734 = vmatpush1.bf16.msra.mxu1 %v733_v26  ;;  %v213_v51 = vld [vmem:[#allocation5 + $0xa8] sm:$0xff]  ;;  %v215_v52 = vld [vmem:[#allocation5 + $0xb8] sm:$0xff]  ;;  %v745_v53 = vpack.c.bf16 %v210_v49, %v208_v48  ;;  %v722_v54 = vpack.c.bf16 %v111_v50, %v110_v46  ;;  %v112_v55 = vld [vmem:[#allocation2 + $0x70] sm:$0xff]  ;;  %v1131_v42 = vshrl.u32 %v226_v41, 7 }
  0x58   :  { %712 = vmatprep.subr.bf16.mxu0 %v964_v0  ;;  %736 = vmatprep.subr.bf16.mxu1 %v735_v29  ;;  %v747_v56 = vpack.c.bf16 %v215_v52, %v213_v51  ;;  %v212_v57 = vld [vmem:[#allocation5 + $0xa0] sm:$0xff]  ;;  %v214_v58 = vld [vmem:[#allocation5 + $0xb0] sm:$0xff]  ;;  %v113_v59 = vld [vmem:[#allocation2 + $0x78] sm:$0xff] }
  0x59   :  { %v217_v60 = vld [vmem:[#allocation5 + $0xc8] sm:$0xff]  ;;  %v219_v61 = vld [vmem:[#allocation5 + $0xd8] sm:$0xff]  ;;  %v749_v62 = vpack.c.bf16 %v214_v58, %v212_v57  ;;  %v725_v63 = vpack.c.bf16 %v113_v59, %v112_v55  ;;  %v216_v3 = vld [vmem:[#allocation5 + $0xc0] sm:$0xff]  ;;  %v228_v43 = vsub.s32 0, %v1131_v42 }
  0x5a   :  { %v751_v2 = vpack.c.bf16 %v219_v61, %v217_v60  ;;  %v218_v4 = vld [vmem:[#allocation5 + $0xd0] sm:$0xff]  ;;  %v1114_v6 = vld [vmem:[%s1192_s0] sm:$0xff]  ;;  %v221_v7 = vld [vmem:[#allocation5 + $0xe8] sm:$0xff] }
  0x5b   :  { %714 = vmatpush3.bf16.msra.mxu0 %v713_v27  ;;  %738 = vmatpush1.bf16.msra.mxu1 %v737_v35  ;;  %v753_v5 = vpack.c.bf16 %v218_v4, %v216_v3  ;;  %v223_v8 = vld [vmem:[#allocation5 + $0xf8] sm:$0xff]  ;;  %v220_v10 = vld [vmem:[#allocation5 + $0xe0] sm:$0xff]  ;;  %v222_v11 = vld [vmem:[#allocation5 + $0xf0] sm:$0xff] }
  0x5c   :  { %715 = vmatprep.subr.bf16.mxu0 %v964_v0  ;;  %740 = vmatprep.subr.bf16.mxu1 %v739_v38  ;;  %v755_v9 = vpack.c.bf16 %v223_v8, %v221_v7  ;;  %v757_v12 = vpack.c.bf16 %v222_v11, %v220_v10  ;;  %v314_v13 = vld [vmem:[#allocation7] sm:$0xff]  ;;  %v315_v14 = vld [vmem:[#allocation7 + $0x8] sm:$0xff]  ;;  %v316_v15 = vld [vmem:[#allocation7 + $0x10] sm:$0xff] }
  0x5d   :  { %v760_v16 = vpack.c.bf16 %v315_v14, %v314_v13  ;;  %v317_v17 = vld [vmem:[#allocation7 + $0x18] sm:$0xff]  ;;  %v596_v19 = vld [vmem:[%s1195_s3] ss:$0 sm:$0xff]  ;;  %v319_v25 = vld [vmem:[#allocation7 + $0x28] sm:$0xff] }
  0x5e   :  { %v763_v18 = vpack.c.bf16 %v317_v17, %v316_v15  ;;  %v318_v24 = vld [vmem:[#allocation7 + $0x20] sm:$0xff]  ;;  %v320_v27 = vld [vmem:[#allocation7 + $0x30] sm:$0xff]  ;;  %v321_v28 = vld [vmem:[#allocation7 + $0x38] sm:$0xff] }
  0x5f   :  { %717 = vmatpush3.bf16.msra.mxu0 %v716_v36  ;;  %742 = vmatpush1.bf16.msra.mxu1 %v741_v44  ;;  %v766_v26 = vpack.c.bf16 %v319_v25, %v318_v24  ;;  %v769_v29 = vpack.c.bf16 %v321_v28, %v320_v27  ;;  %v322_v30 = vld [vmem:[#allocation7 + $0x40] sm:$0xff]  ;;  %v323_v31 = vld [vmem:[#allocation7 + $0x48] sm:$0xff]  ;;  %v324_v33 = vld [vmem:[#allocation7 + $0x50] sm:$0xff] }
  0x60   :  { %718 = vmatprep.subr.bf16.mxu0 %v964_v0  ;;  %744 = vmatprep.subr.bf16.mxu1 %v743_v47  ;;  %v772_v32 = vpack.c.bf16 %v323_v31, %v322_v30  ;;  %v325_v34 = vld [vmem:[#allocation7 + $0x58] sm:$0xff]  ;;  %v326_v35 = vld [vmem:[#allocation7 + $0x60] sm:$0xff]  ;;  %v327_v36 = vld [vmem:[#allocation7 + $0x68] sm:$0xff] }
  0x61   :  { %v778_v37 = vpack.c.bf16 %v327_v36, %v326_v35  ;;  %v328_v38 = vld [vmem:[#allocation7 + $0x70] sm:$0xff]  ;;  %v329_v39 = vld [vmem:[#allocation7 + $0x78] sm:$0xff]  ;;  %v224_v44 = vld [vmem:[%s1197_s5] sm:$0x3] }
  0x62   :  { %v781_v40 = vpack.c.bf16 %v329_v39, %v328_v38  ;;  %v229_v46 = vrot.slane %v224_v44, %v228_v43  ;;  %v408_v3 = vld [vmem:[#allocation8] sm:$0xff]  ;;  %v413_v7 = vld [vmem:[#allocation8 + $0x28] sm:$0xff]  ;;  %v415_v8 = vld [vmem:[#allocation8 + $0x38] sm:$0xff] }
  0x63   :  { %720 = vmatpush3.bf16.msra.mxu0 %v719_v45  ;;  %746 = vmatpush1.bf16.msra.mxu1 %v745_v53  ;;  %v232_v45 = vsub.s32 1, %v1131_v42  ;;  %v787_v10 = vpack.c.bf16 %v415_v8, %v413_v7  ;;  %v412_v11 = vld [vmem:[#allocation8 + $0x20] sm:$0xff]  ;;  %v417_v13 = vld [vmem:[#allocation8 + $0x48] sm:$0xff]  ;;  %v419_v14 = vld [vmem:[#allocation8 + $0x58] sm:$0xff] }
  0x64   :  { %721 = vmatprep.subr.bf16.mxu0 %v964_v0  ;;  %748 = vmatprep.subr.bf16.mxu1 %v747_v56  ;;  %v416_v17 = vld [vmem:[#allocation8 + $0x40] sm:$0xff]  ;;  %v422_v24 = vld [vmem:[#allocation8 + $0x70] sm:$0xff]  ;;  %v427_v27 = vld [vmem:[#allocation8 + $0x98] sm:$0xff] }
  0x65   :  { %v233_v47 = vrot.slane %v224_v44, %v232_v45  ;;  %v424_v28 = vld [vmem:[#allocation8 + $0x80] sm:$0xff]  ;;  %v426_v30 = vld [vmem:[#allocation8 + $0x90] sm:$0xff]  ;;  %v435_v38 = vld [vmem:[#allocation8 + $0xd8] sm:$0xff] }
  0x66   :  { %v801_v31 = vpack.c.bf16 %v426_v30, %v424_v28  ;;  %v430_v35 = vld [vmem:[#allocation8 + $0xb0] sm:$0xff]  ;;  %v432_v39 = vld [vmem:[#allocation8 + $0xc0] sm:$0xff]  ;;  %v437_v44 = vld [vmem:[#allocation8 + $0xe8] sm:$0xff] }
  0x67   :  { %723 = vmatpush3.bf16.msra.mxu0 %v722_v54  ;;  %750 = vmatpush1.bf16.msra.mxu1 %v749_v62  ;;  %v97_v54 = vld [vmem:[%s1193_s1] sm:$0xff]  ;;  %v434_v41 = vld [vmem:[#allocation8 + $0xd0] sm:$0xff] }
  0x68   :  { %724 = vmatprep.subr.bf16.mxu0 %v964_v0  ;;  %752 = vmatprep.subr.bf16.mxu1 %v751_v2  ;;  %v411_v2 = vld [vmem:[#allocation8 + $0x18] sm:$0xff] }
  0x6b   :  { %726 = vmatpush3.bf16.msra.mxu0 %v725_v63  ;;  %754 = vmatpush1.bf16.msra.mxu1 %v753_v5  ;;  %v409_v63 = vld [vmem:[#allocation8 + $0x8] sm:$0xff]  ;;  %v410_v5 = vld [vmem:[#allocation8 + $0x10] sm:$0xff] }
  0x6c   :  { %759 = vmatprep.subr.bf16.mxu0 %v964_v0  ;;  %756 = vmatprep.subr.bf16.mxu1 %v755_v9  ;;  %v783_v4 = vpack.c.bf16 %v411_v2, %v409_v63  ;;  %v785_v9 = vpack.c.bf16 %v410_v5, %v408_v3  ;;  %v440_v63 = vld [vmem:[%s1201_s9] sm:$0x3] }
  0x6d   :  { %v445_v2 = vrot.slane %v440_v63, %v228_v43  ;;  %v449_v3 = vrot.slane %v440_v63, %v232_v45 }
  0x6e   :  { %666 = vmatmul.mubr.f32.vlgmr.msra.gmra.mrb[0].mxu0 %v1114_v6 }
  0x6f   :  { %700 = vmatprep.mubr.msk.f32.mxu0 %vm965_vm0, %v966_v1  ;;  %758 = vmatpush1.bf16.msra.mxu1 %v757_v12  ;;  %v414_v12 = vld [vmem:[#allocation8 + $0x30] sm:$0xff] }
  0x70   :  { %761 = vmatpush3.bf16.msra.mxu0 %v760_v16  ;;  %784 = vmatprep.subr.bf16.mxu1 %v783_v4  ;;  %v789_v15 = vpack.c.bf16 %v414_v12, %v412_v11  ;;  %v791_v16 = vpack.c.bf16 %v419_v14, %v417_v13 }
  0x71   :  { %762 = vmatprep.subr.bf16.mxu0 %v964_v0 }
  0x74   :  { %764 = vmatpush3.bf16.msra.mxu0 %v763_v18  ;;  %v418_v18 = vld [vmem:[#allocation8 + $0x50] sm:$0xff] }
  0x75   :  { %765 = vmatprep.subr.bf16.mxu0 %v964_v0 }
  0x78   :  { %767 = vmatpush3.bf16.msra.mxu0 %v766_v26  ;;  %v425_v26 = vld [vmem:[#allocation8 + $0x88] sm:$0xff] }
  0x79   :  { %768 = vmatprep.subr.bf16.mxu0 %v964_v0 }
  0x7c   :  { %770 = vmatpush3.bf16.msra.mxu0 %v769_v29  ;;  %v799_v29 = vpack.c.bf16 %v427_v27, %v425_v26 }
  0x7d   :  { %771 = vmatprep.subr.bf16.mxu0 %v964_v0 }
  0x80   :  { %773 = vmatpush3.bf16.msra.mxu0 %v772_v32  ;;  %v429_v32 = vld [vmem:[#allocation8 + $0xa8] sm:$0xff] }
  0x81   :  { %774 = vmatprep.subr.bf16.mxu0 %v964_v0 }
 0x141   :  { %v187_v20 = vpop.f32.mrb[0].mxu0 }
 0x142   :  { %v188_v21 = vadd.f32 %v596_v19, %v187_v20  ;;  %v667_v22 = vpop.f32.mrb[1].mxu0  ;;  %v421_v19 = vld [vmem:[#allocation8 + $0x68] sm:$0xff]  ;;  %v423_v20 = vld [vmem:[#allocation8 + $0x78] sm:$0xff] }
 0x143   :  { %v795_v22 = vpack.c.bf16 %v423_v20, %v421_v19 }
 0x144   :  { %v191_v23 = vmax.f32 %v188_v21, 0.0  ;;  %v793_v21 = vpack.c.bf16 %v418_v18, %v416_v17 }
 0x146   :  { %301 = vmatmul.mubr.f32.vlgmr.msra.gmra.mrb[0].mxu1 %v191_v23  ;;  %v420_v23 = vld [vmem:[#allocation8 + $0x60] sm:$0xff] }
 0x147   :  { %516 = vmatprep.mubr.f32.mxu1 %v966_v1  ;;  %v775_v1 = vpack.c.bf16 %v325_v34, %v324_v33  ;;  %786 = vmatpush1.bf16.msra.mxu1 %v785_v9  ;;  %v797_v25 = vpack.c.bf16 %v422_v24, %v420_v23  ;;  %v431_v33 = vld [vmem:[#allocation8 + $0xb8] sm:$0xff] }
 0x148   :  { %788 = vmatprep.subr.bf16.mxu1 %v787_v10  ;;  %v803_v34 = vpack.c.bf16 %v431_v33, %v429_v32 }
 0x149   :  { %776 = vmatpush3.bf16.msra.mxu0 %v775_v1  ;;  %v428_v1 = vld [vmem:[#allocation8 + $0xa0] sm:$0xff] }
 0x14a   :  { %777 = vmatprep.subr.bf16.mxu0 %v964_v0  ;;  %v805_v36 = vpack.c.bf16 %v430_v35, %v428_v1 }
 0x14b   :  { %790 = vmatpush1.bf16.msra.mxu1 %v789_v15 }
 0x14c   :  { %792 = vmatprep.subr.bf16.mxu1 %v791_v16 }
 0x14d   :  { %779 = vmatpush3.bf16.msra.mxu0 %v778_v37  ;;  %v433_v37 = vld [vmem:[#allocation8 + $0xc8] sm:$0xff] }
 0x14e   :  { %780 = vmatprep.subr.bf16.mxu0 %v964_v0 }
 0x14f   :  { %794 = vmatpush1.bf16.msra.mxu1 %v793_v21 }
 0x150   :  { %796 = vmatprep.subr.bf16.mxu1 %v795_v22 }
 0x151   :  { %782 = vmatpush3.bf16.msra.mxu0 %v781_v40  ;;  %v807_v40 = vpack.c.bf16 %v435_v38, %v433_v37 }
 0x153   :  { %798 = vmatpush1.bf16.msra.mxu1 %v797_v25 }
 0x154   :  { %800 = vmatprep.subr.bf16.mxu1 %v799_v29 }
 0x157   :  { %802 = vmatpush1.bf16.msra.mxu1 %v801_v31 }
 0x158   :  { %804 = vmatprep.subr.bf16.mxu1 %v803_v34 }
 0x15b   :  { %806 = vmatpush1.bf16.msra.mxu1 %v805_v36 }
 0x15c   :  { %808 = vmatprep.subr.bf16.mxu1 %v807_v40 }
 0x219   :  { %v302_v48 = vpop.f32.mrb[0].mxu1 }
 0x21a   :  { %v303_v0 = vadd.f32 %v302_v48, %v229_v46  ;;  %v304_v49 = vpop.f32.mrb[1].mxu1  ;;  %v439_v46 = vld [vmem:[#allocation8 + $0xf8] sm:$0xff] }
 0x21b   :  { %v305_v50 = vadd.f32 %v304_v49, %v233_v47  ;;  %v809_v47 = vpack.c.bf16 %v434_v41, %v432_v39  ;;  %v811_v48 = vpack.c.bf16 %v439_v46, %v437_v44  ;;  %v438_v49 = vld [vmem:[#allocation8 + $0xf0] sm:$0xff] }
 0x21c   :  { %307 = vst [vmem:[%s1202_s10] sm:$0xff] %v303_v0  ;;  %v529_v61 = vmul.f32 %v303_v0, %v303_v0 }
 0x21d   :  { %308 = vst [vmem:[%s1202_s10 + $0x8] sm:$0xff] %v305_v50  ;;  %v309_v51 = vmul.f32 0.5, %v305_v50  ;;  %v525_v53 = vsub.f32 0.0, %v305_v50  ;;  %810 = vmatpush1.bf16.msra.mxu1 %v809_v47 }
 0x21e   :  { %812 = vmatprep.subr.bf16.mxu1 %v811_v48 }
 0x21f   :  { %v310_v52 = vmul.f32 1.442695, %v309_v51  ;;  %v598_v57 = vadd.f32 -1.0, %v525_v53 }
 0x221   :  { %832 = vpow2.f32 %v310_v52 }
 0x22b   :  { %v833_v55 = vpop.eup %832 }
 0x22c   :  { %v312_v56 = vmul.f32 %v833_v55, %v97_v54  ;;  %v527_v58 = vmul.f32 %v833_v55, %v833_v55 }
 0x22e   :  { %v313_v59 = vadd.f32 %v312_v56, %v303_v0  ;;  %v528_v60 = vadd.f32 %v598_v57, %v527_v58  ;;  %v436_v0 = vld [vmem:[#allocation8 + $0xe0] sm:$0xff] }
 0x22f   :  { %v813_v50 = vpack.c.bf16 %v438_v49, %v436_v0  ;;  %v597_v58 = vld [vmem:[%s1199_s7] ss:$0 sm:$0xff] }
 0x230   :  { %701 = vmatmul.mubr.f32.vlgmr.msra.gmra.mrb[2].mxu0 %v313_v59  ;;  %v530_v62 = vadd.f32 %v529_v61, %v528_v60 }
 0x231   :  { %814 = vmatpush1.bf16.msra.mxu1 %v813_v50 }
 0x232   :  { %538 = vadd.xlane.f32.xlu0 %v530_v62 }
 0x2bf   :  { %v539_v51 = vpop.xlane.xlu0 %538 }
 0x2c0   :  { %v540_v52 = vrot.slane %v539_v51, 4 }
 0x2c2   :  { %v541_v53 = vadd.f32 %v540_v52, %v539_v51 }
 0x2c4   :  { %v542_v54 = vrot.slane %v541_v53, 2 }
 0x2c6   :  { %v543_v55 = vadd.f32 %v542_v54, %v541_v53 }
 0x2c8   :  { %v544_v56 = vrot.slane %v543_v55, 1 }
 0x2ca   :  { %v545_v57 = vadd.f32 %v544_v56, %v543_v55 }
 0x2cc   :  { %815 = vpush %v545_v57 }
 0x2fd   :  { %s816_s1 = spop %815 }
 0x2fe   :  { %548 = sst [smem:[#allocation10]] %s816_s1 }
 0x303   :  { %v403_v59 = vpop.f32.mrb[2].mxu0 }
 0x304   :  { %v404_v60 = vadd.f32 %v597_v58, %v403_v59  ;;  %v702_v61 = vpop.f32.mrb[3].mxu0 }
 0x306   :  { %834 = vtanh.f32 %v404_v60 }
 0x310   :  { %v835_v62 = vpop.eup %834 }
 0x311   :  { %517 = vmatmul.mubr.f32.vlgmr.msra.gmra.mrb[2].mxu1 %v835_v62 }
 0x3e4   :  { %v518_v4 = vpop.f32.mrb[2].mxu1 }
 0x3e5   :  { %v519_v5 = vadd.f32 %v518_v4, %v445_v2  ;;  %v520_v7 = vpop.f32.mrb[3].mxu1 }
 0x3e6   :  { %v521_v8 = vadd.f32 %v520_v7, %v449_v3 }
 0x3e7   :  { %523 = vst [vmem:[%s1203_s11] sm:$0xff] %v519_v5  ;;  %v531_v43 = vsub.f32 %v1114_v6, %v519_v5 }
 0x3e8   :  { %524 = vst [vmem:[%s1203_s11 + $0x8] sm:$0xff] %v521_v8  ;;  %v532_v9 = vsub.f32 0.0, %v521_v8 }
 0x3ea   :  { %v533_v10 = vmul.f32 1.442695, %v532_v9 }
 0x3ec   :  { %836 = vpow2.f32 %v533_v10 }
 0x3f6   :  { %v837_v11 = vpop.eup %836 }
 0x3f7   :  { %v535_v42 = vmul.f32 %v837_v11, %v531_v43 }
 0x3f9   :  { %v536_v45 = vmul.f32 %v535_v42, %v531_v43 }
 0x3fb   :  { %v537_v12 = vadd.f32 %v536_v45, %v521_v8 }
 0x3fd   :  { %549 = vadd.xlane.f32.xlu0 %v537_v12 }
 0x3fe   :  { %935 = shalt.err (!%p932_p6)
}
 0x3ff   :  { %s967_s4 = smov [#allocation10]   ;;  %s936_s26 = scalar_lea.hbm %s1205_s13, 16 }
 0x400   :  { %571 = dma.smem_to_hbm %s967_s4, 16, %s1204_s12, [#allocation4]  }
 0x401   :  { %p937_p7 = scmp.ne.s32.totalorder %s1205_s13, %s936_s26  ;;  %p940_p8 = scmp.lt.u32.totalorder %s936_s26, %s1205_s13 }
 0x403   :  { %p942_p9 = pnand %p940_p8, %p937_p7 }
 0x48a   :  { %v550_v6 = vpop.xlane.xlu0 %549 }
 0x48b   :  { %v551_v13 = vrot.slane %v550_v6, 4 }
 0x48d   :  { %v552_v14 = vadd.f32 %v551_v13, %v550_v6 }
 0x48f   :  { %v553_v15 = vrot.slane %v552_v14, 2 }
 0x491   :  { %v554_v16 = vadd.f32 %v553_v15, %v552_v14 }
 0x493   :  { %v555_v17 = vrot.slane %v554_v16, 1 }
 0x495   :  { %v556_v18 = vadd.f32 %v555_v17, %v554_v16 }
 0x497   :  { %817 = vpush %v556_v18 }
 0x4c8   :  { %s818_s0 = spop %817 }
 0x4c9   :  { %559 = sst [smem:[#allocation11]] %s818_s0 }
 0x4ca   :  { %945 = shalt.err (!%p942_p9)
}
 0x4cb   :  { %s968_s15 = smov [#allocation11]  }
 0x4cc   :  { %579 = dma.smem_to_hbm %s968_s15, 16, %s1205_s13, [#allocation12]  }
 0x4cd   :  { %952 = dma.done.wait [#allocation4], 16  }
 0x4ce   :  { %953 = vsyncadd [#allocation4], 4294967280 }
 0x4cf   :  { %954 = dma.done.wait [#allocation12], 16  }
 0x4d0   :  { %955 = vsyncadd [#allocation12], 4294967280 }
 0x4d1   :  { %590 = sfence }
 0x4d2   :  { %591 = vsyncpa [#allocation3], 1 }
 0x4d3   :  { %592 = vsyncpa [#allocation6], 1 }
 0x4d4   :  { %593 = vsyncpa [#allocation9], 1 }
 0x4d5   :  { %594 = vsyncpa [#allocation4], 1 }
 0x4d6   :  { %595 = vsyncpa [#allocation12], 1 }

</bundles_post_ra>
